<compile_context>
chip_gen: v7x
topology: tpu7x:2x2x1
jax: 0.10.0
libtpu: 0.0.40
codegen_flags: <defaults>
</compile_context>

<pallas_src>
import functools

import jax
import jax.numpy as jnp
from jax.experimental import pallas as pl
from jax.experimental.pallas import tpu as pltpu


def _round_up(x, m):
    return ((x + m - 1) // m) * m


def _dice_sums_kernel(x_ref, t_ref, o_ref, *, C, tr, half, nt, full_blocks,
                      hw, use_softmax, needs_mask, approx_recip):
    """Accumulate per-class (C, 128) lane partials of [tp, cnt, sp].

    x_ref : (1, C, tr, 128)  logits tile (input dtype), classes on the
                             leading (non-tiled) axis, pixels as (rows, lanes)
    t_ref : (1, 1, tr, 128)  narrow-int class-label tile
    o_ref : (1, 1, 3, C, 128) float32 per-(split, batch) lane-partial output,
                             accumulated in place across the pixel-block axis
    """
    s = pl.program_id(0)                  # core-split over pixel blocks
    j = pl.program_id(2)                  # pixel block within the split
    b = s * half + j                      # global pixel-block index

    @pl.when(j == 0)
    def _init():
        o_ref[...] = jnp.zeros_like(o_ref)

    def _accumulate(masked):
        x = x_ref[0].astype(jnp.float32)          # (C, tr, 128), f32 in-register
        t = t_ref[0, 0].astype(jnp.int32)         # (tr, 128), widened in-register

        if masked:
            # Global flat pixel index of each (row, lane) element of this block.
            row = jax.lax.broadcasted_iota(jnp.int32, (tr, 128), 0)
            lane = jax.lax.broadcasted_iota(jnp.int32, (tr, 128), 1)
            flat = (b * tr + row) * 128 + lane
            valid = flat < hw                      # (tr, 128) bool
            # Out-of-range class id on pad lanes => one-hot is all-zero there.
            t = jnp.where(valid, t, C)

        if use_softmax:
            # softmax over classes == leading axis -> elementwise VPU ops only
            m = jnp.max(x, axis=0)                 # (tr, 128)
            e = jnp.exp(x - m[None])               # (C, tr, 128)
            ssum = jnp.sum(e, axis=0)              # (tr, 128)
            if approx_recip:
                p = e * pl.reciprocal(ssum, approx=True)[None]   # EUP slot
            else:
                p = e / ssum[None]
        else:
            p = jax.nn.sigmoid(x)                  # C == 1 path

        if masked:
            # Zero pad-lane probabilities so sum(p) (false positives) and any
            # NaN/Inf from garbage pad data never reach the accumulators.
            p = jnp.where(valid[None], p, 0.0)

        # Per-class (1, 128) lane partials; the 128->1 reduce is deferred to
        # the wrapper.  C is small and static -> Python unroll; the compare is
        # against a scalar class id (no (C, tr, 128) iota materialized).
        # TODO(synk): for very large C (hundreds of classes) switch to a
        # vectorized iota/compare to avoid trace-size blowup of this unroll.
        tp_rows, cnt_rows, sp_rows = [], [], []
        for c in range(C):
            p_c = p[c]                                         # (tr, 128)
            g_c = (t == c).astype(jnp.float32)                 # (tr, 128)
            tp_rows.append(jnp.sum(p_c * g_c, axis=0, keepdims=True))
            cnt_rows.append(jnp.sum(g_c, axis=0, keepdims=True))
            sp_rows.append(jnp.sum(p_c, axis=0, keepdims=True))

        o_ref[0, 0, 0] += jnp.concatenate(tp_rows, axis=0)     # (C, 128)
        o_ref[0, 0, 1] += jnp.concatenate(cnt_rows, axis=0)
        o_ref[0, 0, 2] += jnp.concatenate(sp_rows, axis=0)

    if not needs_mask:
        # Static fast path: every block is entirely valid, no masking at all.
        _accumulate(False)
    else:
        @pl.when(b < full_blocks)
        def _clean():
            _accumulate(False)

        @pl.when(jnp.logical_and(b >= full_blocks, b < nt))
        def _ragged():
            _accumulate(True)
        # Blocks with b >= nt only exist when the 2-way core split does not
        # divide the block count; their index_map is clamped onto the previous
        # block (no extra DMA) and they contribute nothing.


def dice_loss(x, target, *, weight_v=None, alpha=0.5, beta=0.5, smooth=1e-7,
              tile_rows=None, approx_reciprocal=True):
    """Pallas implementation of DiceLoss.forward.

    x      : (N, C, d1, ..., dn) float -- raw logits (channel-first, like PyTorch)
    target : (N, d1, ..., dn)    int   -- class ids in [0, C-1]
    """
    N, C = x.shape[0], x.shape[1]
    HW = 1
    for d in x.shape[2:]:
        HW *= d

    # --- labels stay narrow in HBM (v5e/v6e are HBM-bound); widened in-kernel.
    if C <= 126:
        ldt = jnp.int8
    elif C <= 32766:
        ldt = jnp.int16
    else:
        ldt = jnp.int32

    x3 = x.reshape(N, C, HW)                       # free reshape, no transpose
    t3 = target.reshape(N, 1, HW).astype(ldt)

    # --- pack pixels as (rows, 128) so every vreg is lane-dense even for small C.
    HWp = _round_up(HW, 128)
    if HWp != HW:
        # TODO(synk): lane-pad copy; only hit when prod(spatial) % 128 != 0.
        x3 = jnp.pad(x3, ((0, 0), (0, 0), (0, HWp - HW)))
        t3 = jnp.pad(t3, ((0, 0), (0, 0), (0, HWp - HW)))
    R = HWp // 128
    x4 = x3.reshape(N, C, R, 128)
    t4 = t3.reshape(N, 1, R, 128)

    # --- tile size: ~4 MiB of f32 logits per grid step (amortizes the ~0.35us
    # per-step pipeline overhead; fits v7x's 64 MiB VMEM with temporaries).
    if tile_rows is None:
        target_px = (4 * 1024 * 1024 // 4) // max(C, 1)        # f32 elems / class
        tile_rows = max(32, (target_px // 128) // 32 * 32)     # 128-lane rows
    tr = R if tile_rows >= R else int(tile_rows)

    nt = pl.cdiv(R, tr)                 # pixel blocks holding real data
    nsplit = 2 if nt >= 2 else 1        # v7x megacore split of the pixel axis
    half = pl.cdiv(nt, nsplit)
    covered_px = nsplit * half * tr * 128
    needs_mask = covered_px != HW       # any pad lanes / pad rows / dup blocks?
    full_blocks = HW // (tr * 128)      # blocks entirely inside the valid range

    kernel = functools.partial(
        _dice_sums_kernel, C=C, tr=tr, half=half, nt=nt,
        full_blocks=full_blocks, hw=HW, use_softmax=(C > 1),
        needs_mask=needs_mask, approx_recip=approx_reciprocal)

    def pix_map(s, n, j):
        # Clamp so the (at most one) overhang block of an odd split re-targets
        # the previous block: no OOB DMA and no re-fetch (index unchanged).
        return (n, 0, jnp.minimum(s * half + j, nt - 1), 0)

    sums = pl.pallas_call(
        kernel,
        out_shape=jax.ShapeDtypeStruct((nsplit, N, 3, C, 128), jnp.float32),
        grid_spec=pltpu.PrefetchScalarGridSpec(
            num_scalar_prefetch=0,
            grid=(nsplit, N, half),
            in_specs=[
                pl.BlockSpec((1, C, tr, 128), pix_map),
                pl.BlockSpec((1, 1, tr, 128), pix_map),
                # NOTE: if an xprof trace ever shows exposed copy-in on v5e,
                # add pipeline_mode=pl.Buffered(3) to these two specs.
            ],
            out_specs=pl.BlockSpec((1, 1, 3, C, 128),
                                   lambda s, n, j: (s, n, 0, 0, 0)),
        ),
        compiler_params=pltpu.CompilerParams(
            dimension_semantics=("parallel", "parallel", "arbitrary"),
            vmem_limit_bytes=48 * 1024 * 1024),
    )(x4, t4)

    # (nsplit, N, 3, C, 128) -> (3, C): fold split, batch and lane partials.
    totals = jnp.sum(sums, axis=(0, 1, 4))
    tp, cnt, sp = totals[0], totals[1], totals[2]
    fn = cnt - tp                               # sum((1 - p) * g)
    fp = sp - tp                                # sum(p * (1 - g))
    dices = (tp + smooth) / (tp + alpha * fn + beta * fp + smooth)

    # effective weight = F.normalize(weight_v, p=1, dim=0)
    wv = (jnp.ones((C,), jnp.float32) if weight_v is None
          else jnp.asarray(weight_v, jnp.float32))
    weight = wv / jnp.maximum(jnp.sum(jnp.abs(wv)), 1e-12)

    return jnp.sum(weight * (1.0 - dices))


def _dice_loss_ref(x, target, alpha=0.5, beta=0.5, smooth=1e-7):
    """Pure-JAX reference mirroring the PyTorch module."""
    N, C = x.shape[0], x.shape[1]
    xf = x.astype(jnp.float32)
    p = jax.nn.softmax(xf, axis=1) if C > 1 else jax.nn.sigmoid(xf)
    p = jnp.moveaxis(p, 1, -1).reshape(-1, C)
    g = jax.nn.one_hot(target.reshape(-1), C, dtype=jnp.float32)
    tp = jnp.sum(p * g, axis=0)
    fn = jnp.sum((1.0 - p) * g, axis=0)
    fp = jnp.sum(p * (1.0 - g), axis=0)
    dices = (tp + smooth) / (tp + alpha * fn + beta * fp + smooth)
    weight = jnp.ones((C,), jnp.float32) / C
    return jnp.sum(weight * (1.0 - dices))


if __name__ == "__main__":
    key = jax.random.PRNGKey(0)
    k1, k2, k3, k4, k5 = jax.random.split(key, 5)

    def check(name, xa, ta, tol, **kw):
        loss = dice_loss(xa, ta, **kw)
        jax.block_until_ready(loss)
        ref = _dice_loss_ref(xa, ta)
        assert jnp.allclose(loss, ref, atol=tol, rtol=tol), (name, loss, ref)

    # 1) canonical small case: (N, C, H, W) = (2, 4, 16, 16), f32
    x1 = jax.random.normal(k1, (2, 4, 16, 16), dtype=jnp.float32)
    t1 = jax.random.randint(k2, (2, 16, 16), 0, 4, dtype=jnp.int32)
    check("exact", x1, t1, 1e-5, approx_reciprocal=False)   # tight: exact math
    check("approx", x1, t1, 5e-3)                           # default EUP recip

    # 2) binary / sigmoid path (C == 1; target values in [0, C-1] = {0})
    x2 = jax.random.normal(k3, (2, 1, 16, 16), dtype=jnp.float32)
    t2 = jnp.zeros((2, 16, 16), dtype=jnp.int32)
    check("sigmoid", x2, t2, 1e-5)

    # 3) bf16 + ragged pixels (HW % 128 != 0) + multi-block + core split path
    x3 = jax.random.normal(k4, (1, 3, 90, 130), dtype=jnp.bfloat16)
    t3 = jax.random.randint(k5, (1, 90, 130), 0, 3, dtype=jnp.int32)
    check("ragged", x3, t3, 5e-3, tile_rows=32)

    print("KERNEL_OK")
</pallas_src>

<mosaic_0001>
module attributes {stable_mosaic.version = 11 : i64} {
  func.func @_dice_sums_kernel(%arg0: i32, %arg1: i32, %arg2: i32, %arg3: memref<1x4x2x128xf32, #tpu.memory_space<vmem>>, %arg4: memref<1x1x2x128xi8, #tpu.memory_space<vmem>>, %arg5: memref<1x1x3x4x128xf32, #tpu.memory_space<vmem>>) attributes {dimension_semantics = [#tpu.dimension_semantics<parallel>, #tpu.dimension_semantics<parallel>, #tpu.dimension_semantics<arbitrary>], iteration_bounds = array<i64: 1, 2, 1>, scalar_prefetch = 0 : i64, scratch_operands = 0 : i64, tpu.core_type = #tpu.core_type<tc>, window_params = [{transform_indices = @transform_0, window_bounds = array<i64: 1, 4, 2, 128>}, {transform_indices = @transform_1, window_bounds = array<i64: 1, 1, 2, 128>}, {transform_indices = @transform_2, window_bounds = array<i64: 1, 1, 3, 4, 128>}]} {
    %c0_i32 = arith.constant 0 : i32
    %0 = arith.cmpi eq, %arg2, %c0_i32 : i32
    %1 = arith.extui %0 : i1 to i32
    %c0_i32_0 = arith.constant 0 : i32
    %2 = arith.cmpi ne, %1, %c0_i32_0 : i32
    scf.if %2 {
      %cst_50 = arith.constant 0.000000e+00 : f32
      %90 = vector.broadcast %cst_50 : f32 to vector<1x1x3x4x128xf32>
      %c0_51 = arith.constant 0 : index
      %c0_52 = arith.constant 0 : index
      %c0_53 = arith.constant 0 : index
      %c0_54 = arith.constant 0 : index
      %c0_55 = arith.constant 0 : index
      %91 = vector.load %arg5[%c0_51, %c0_52, %c0_53, %c0_54, %c0_55] : memref<1x1x3x4x128xf32, #tpu.memory_space<vmem>>, vector<1x1x3x4x128xf32>
      tpu.vector_store %arg5[%c0_51, %c0_52, %c0_53, %c0_54, %c0_55], %90 {strides = array<i32>} : memref<1x1x3x4x128xf32, #tpu.memory_space<vmem>>, vector<1x1x3x4x128xf32>,
    } else {
    }
    %c0 = arith.constant 0 : index
    %c0_1 = arith.constant 0 : index
    %c0_2 = arith.constant 0 : index
    %c0_3 = arith.constant 0 : index
    %3 = vector.load %arg3[%c0, %c0_1, %c0_2, %c0_3] : memref<1x4x2x128xf32, #tpu.memory_space<vmem>>, vector<1x4x2x128xf32>
    %4 = vector.shape_cast %3 : vector<1x4x2x128xf32> to vector<4x2x128xf32>
    %c0_4 = arith.constant 0 : index
    %c0_5 = arith.constant 0 : index
    %c0_6 = arith.constant 0 : index
    %c0_7 = arith.constant 0 : index
    %5 = vector.load %arg4[%c0_4, %c0_5, %c0_6, %c0_7] : memref<1x1x2x128xi8, #tpu.memory_space<vmem>>, vector<1x1x2x128xi8>
    %6 = vector.shape_cast %5 : vector<1x1x2x128xi8> to vector<2x128xi8>
    %7 = arith.extsi %6 : vector<2x128xi8> to vector<2x128xi32>
    %cst = arith.constant dense<0xFF800000> : vector<2x128xf32>
    %8 = vector.multi_reduction <maximumf>, %4, %cst [0] : vector<4x2x128xf32> to vector<2x128xf32>
    %9 = vector.shape_cast %8 : vector<2x128xf32> to vector<1x2x128xf32>
    %10 = vector.broadcast %9 : vector<1x2x128xf32> to vector<4x2x128xf32>
    %11 = arith.subf %4, %10 : vector<4x2x128xf32>
    %12 = math.exp %11 : vector<4x2x128xf32>
    %cst_8 = arith.constant dense<0.000000e+00> : vector<2x128xf32>
    %13 = vector.multi_reduction <add>, %12, %cst_8 [0] : vector<4x2x128xf32> to vector<2x128xf32>
    %14 = vector.shape_cast %13 : vector<2x128xf32> to vector<1x2x128xf32>
    %15 = vector.broadcast %14 : vector<1x2x128xf32> to vector<4x2x128xf32>
    %16 = arith.divf %12, %15 : vector<4x2x128xf32>
    %17 = vector.extract_strided_slice %16 {offsets = [0, 0, 0], sizes = [1, 2, 128], strides = [1, 1, 1]} : vector<4x2x128xf32> to vector<1x2x128xf32>
    %18 = vector.shape_cast %17 : vector<1x2x128xf32> to vector<2x128xf32>
    %c0_i32_9 = arith.constant 0 : i32
    %19 = vector.broadcast %c0_i32_9 : i32 to vector<2x128xi32>
    %20 = arith.cmpi eq, %7, %19 : vector<2x128xi32>
    %21 = arith.extui %20 : vector<2x128xi1> to vector<2x128xi32>
    %22 = arith.sitofp %21 : vector<2x128xi32> to vector<2x128xf32>
    %23 = arith.mulf %18, %22 : vector<2x128xf32>
    %cst_10 = arith.constant dense<0.000000e+00> : vector<128xf32>
    %24 = vector.multi_reduction <add>, %23, %cst_10 [0] : vector<2x128xf32> to vector<128xf32>
    %25 = vector.shape_cast %24 : vector<128xf32> to vector<1x128xf32>
    %cst_11 = arith.constant dense<0.000000e+00> : vector<128xf32>
    %26 = vector.multi_reduction <add>, %22, %cst_11 [0] : vector<2x128xf32> to vector<128xf32>
    %27 = vector.shape_cast %26 : vector<128xf32> to vector<1x128xf32>
    %cst_12 = arith.constant dense<0.000000e+00> : vector<128xf32>
    %28 = vector.multi_reduction <add>, %18, %cst_12 [0] : vector<2x128xf32> to vector<128xf32>
    %29 = vector.shape_cast %28 : vector<128xf32> to vector<1x128xf32>
    %30 = vector.extract_strided_slice %16 {offsets = [1, 0, 0], sizes = [1, 2, 128], strides = [1, 1, 1]} : vector<4x2x128xf32> to vector<1x2x128xf32>
    %31 = vector.shape_cast %30 : vector<1x2x128xf32> to vector<2x128xf32>
    %c1_i32 = arith.constant 1 : i32
    %32 = vector.broadcast %c1_i32 : i32 to vector<2x128xi32>
    %33 = arith.cmpi eq, %7, %32 : vector<2x128xi32>
    %34 = arith.extui %33 : vector<2x128xi1> to vector<2x128xi32>
    %35 = arith.sitofp %34 : vector<2x128xi32> to vector<2x128xf32>
    %36 = arith.mulf %31, %35 : vector<2x128xf32>
    %cst_13 = arith.constant dense<0.000000e+00> : vector<128xf32>
    %37 = vector.multi_reduction <add>, %36, %cst_13 [0] : vector<2x128xf32> to vector<128xf32>
    %38 = vector.shape_cast %37 : vector<128xf32> to vector<1x128xf32>
    %cst_14 = arith.constant dense<0.000000e+00> : vector<128xf32>
    %39 = vector.multi_reduction <add>, %35, %cst_14 [0] : vector<2x128xf32> to vector<128xf32>
    %40 = vector.shape_cast %39 : vector<128xf32> to vector<1x128xf32>
    %cst_15 = arith.constant dense<0.000000e+00> : vector<128xf32>
    %41 = vector.multi_reduction <add>, %31, %cst_15 [0] : vector<2x128xf32> to vector<128xf32>
    %42 = vector.shape_cast %41 : vector<128xf32> to vector<1x128xf32>
    %43 = vector.extract_strided_slice %16 {offsets = [2, 0, 0], sizes = [1, 2, 128], strides = [1, 1, 1]} : vector<4x2x128xf32> to vector<1x2x128xf32>
    %44 = vector.shape_cast %43 : vector<1x2x128xf32> to vector<2x128xf32>
    %c2_i32 = arith.constant 2 : i32
    %45 = vector.broadcast %c2_i32 : i32 to vector<2x128xi32>
    %46 = arith.cmpi eq, %7, %45 : vector<2x128xi32>
    %47 = arith.extui %46 : vector<2x128xi1> to vector<2x128xi32>
    %48 = arith.sitofp %47 : vector<2x128xi32> to vector<2x128xf32>
    %49 = arith.mulf %44, %48 : vector<2x128xf32>
    %cst_16 = arith.constant dense<0.000000e+00> : vector<128xf32>
    %50 = vector.multi_reduction <add>, %49, %cst_16 [0] : vector<2x128xf32> to vector<128xf32>
    %51 = vector.shape_cast %50 : vector<128xf32> to vector<1x128xf32>
    %cst_17 = arith.constant dense<0.000000e+00> : vector<128xf32>
    %52 = vector.multi_reduction <add>, %48, %cst_17 [0] : vector<2x128xf32> to vector<128xf32>
    %53 = vector.shape_cast %52 : vector<128xf32> to vector<1x128xf32>
    %cst_18 = arith.constant dense<0.000000e+00> : vector<128xf32>
    %54 = vector.multi_reduction <add>, %44, %cst_18 [0] : vector<2x128xf32> to vector<128xf32>
    %55 = vector.shape_cast %54 : vector<128xf32> to vector<1x128xf32>
    %56 = vector.extract_strided_slice %16 {offsets = [3, 0, 0], sizes = [1, 2, 128], strides = [1, 1, 1]} : vector<4x2x128xf32> to vector<1x2x128xf32>
    %57 = vector.shape_cast %56 : vector<1x2x128xf32> to vector<2x128xf32>
    %c3_i32 = arith.constant 3 : i32
    %58 = vector.broadcast %c3_i32 : i32 to vector<2x128xi32>
    %59 = arith.cmpi eq, %7, %58 : vector<2x128xi32>
    %60 = arith.extui %59 : vector<2x128xi1> to vector<2x128xi32>
    %61 = arith.sitofp %60 : vector<2x128xi32> to vector<2x128xf32>
    %62 = arith.mulf %57, %61 : vector<2x128xf32>
    %cst_19 = arith.constant dense<0.000000e+00> : vector<128xf32>
    %63 = vector.multi_reduction <add>, %62, %cst_19 [0] : vector<2x128xf32> to vector<128xf32>
    %64 = vector.shape_cast %63 : vector<128xf32> to vector<1x128xf32>
    %cst_20 = arith.constant dense<0.000000e+00> : vector<128xf32>
    %65 = vector.multi_reduction <add>, %61, %cst_20 [0] : vector<2x128xf32> to vector<128xf32>
    %66 = vector.shape_cast %65 : vector<128xf32> to vector<1x128xf32>
    %cst_21 = arith.constant dense<0.000000e+00> : vector<128xf32>
    %67 = vector.multi_reduction <add>, %57, %cst_21 [0] : vector<2x128xf32> to vector<128xf32>
    %68 = vector.shape_cast %67 : vector<128xf32> to vector<1x128xf32>
    %c0_22 = arith.constant 0 : index
    %c0_23 = arith.constant 0 : index
    %c0_24 = arith.constant 0 : index
    %c0_25 = arith.constant 0 : index
    %c0_26 = arith.constant 0 : index
    %69 = vector.load %arg5[%c0_22, %c0_23, %c0_24, %c0_25, %c0_26] : memref<1x1x3x4x128xf32, #tpu.memory_space<vmem>>, vector<1x1x1x4x128xf32>
    %70 = vector.shape_cast %69 : vector<1x1x1x4x128xf32> to vector<4x128xf32>
    %71 = tpu.concatenate %25, %38, %51, %64 in 0 : vector<1x128xf32>, vector<1x128xf32>, vector<1x128xf32>, vector<1x128xf32> -> vector<4x128xf32>
    %72 = arith.addf %70, %71 : vector<4x128xf32>
    %c0_27 = arith.constant 0 : index
    %c0_28 = arith.constant 0 : index
    %c0_29 = arith.constant 0 : index
    %c0_30 = arith.constant 0 : index
    %c0_31 = arith.constant 0 : index
    %73 = vector.load %arg5[%c0_27, %c0_28, %c0_29, %c0_30, %c0_31] : memref<1x1x3x4x128xf32, #tpu.memory_space<vmem>>, vector<1x1x1x4x128xf32>
    %74 = vector.shape_cast %73 : vector<1x1x1x4x128xf32> to vector<4x128xf32>
    %75 = vector.shape_cast %72 : vector<4x128xf32> to vector<1x1x1x4x128xf32>
    tpu.vector_store %arg5[%c0_27, %c0_28, %c0_29, %c0_30, %c0_31], %75 {strides = array<i32>} : memref<1x1x3x4x128xf32, #tpu.memory_space<vmem>>, vector<1x1x1x4x128xf32>,
    %c0_32 = arith.constant 0 : index
    %c0_33 = arith.constant 0 : index
    %c1 = arith.constant 1 : index
    %c0_34 = arith.constant 0 : index
    %c0_35 = arith.constant 0 : index
    %76 = vector.load %arg5[%c0_32, %c0_33, %c1, %c0_34, %c0_35] : memref<1x1x3x4x128xf32, #tpu.memory_space<vmem>>, vector<1x1x1x4x128xf32>
    %77 = vector.shape_cast %76 : vector<1x1x1x4x128xf32> to vector<4x128xf32>
    %78 = tpu.concatenate %27, %40, %53, %66 in 0 : vector<1x128xf32>, vector<1x128xf32>, vector<1x128xf32>, vector<1x128xf32> -> vector<4x128xf32>
    %79 = arith.addf %77, %78 : vector<4x128xf32>
    %c0_36 = arith.constant 0 : index
    %c0_37 = arith.constant 0 : index
    %c1_38 = arith.constant 1 : index
    %c0_39 = arith.constant 0 : index
    %c0_40 = arith.constant 0 : index
    %80 = vector.load %arg5[%c0_36, %c0_37, %c1_38, %c0_39, %c0_40] : memref<1x1x3x4x128xf32, #tpu.memory_space<vmem>>, vector<1x1x1x4x128xf32>
    %81 = vector.shape_cast %80 : vector<1x1x1x4x128xf32> to vector<4x128xf32>
    %82 = vector.shape_cast %79 : vector<4x128xf32> to vector<1x1x1x4x128xf32>
    tpu.vector_store %arg5[%c0_36, %c0_37, %c1_38, %c0_39, %c0_40], %82 {strides = array<i32>} : memref<1x1x3x4x128xf32, #tpu.memory_space<vmem>>, vector<1x1x1x4x128xf32>,
    %c0_41 = arith.constant 0 : index
    %c0_42 = arith.constant 0 : index
    %c2 = arith.constant 2 : index
    %c0_43 = arith.constant 0 : index
    %c0_44 = arith.constant 0 : index
    %83 = vector.load %arg5[%c0_41, %c0_42, %c2, %c0_43, %c0_44] : memref<1x1x3x4x128xf32, #tpu.memory_space<vmem>>, vector<1x1x1x4x128xf32>
    %84 = vector.shape_cast %83 : vector<1x1x1x4x128xf32> to vector<4x128xf32>
    %85 = tpu.concatenate %29, %42, %55, %68 in 0 : vector<1x128xf32>, vector<1x128xf32>, vector<1x128xf32>, vector<1x128xf32> -> vector<4x128xf32>
    %86 = arith.addf %84, %85 : vector<4x128xf32>
    %c0_45 = arith.constant 0 : index
    %c0_46 = arith.constant 0 : index
    %c2_47 = arith.constant 2 : index
    %c0_48 = arith.constant 0 : index
    %c0_49 = arith.constant 0 : index
    %87 = vector.load %arg5[%c0_45, %c0_46, %c2_47, %c0_48, %c0_49] : memref<1x1x3x4x128xf32, #tpu.memory_space<vmem>>, vector<1x1x1x4x128xf32>
    %88 = vector.shape_cast %87 : vector<1x1x1x4x128xf32> to vector<4x128xf32>
    %89 = vector.shape_cast %86 : vector<4x128xf32> to vector<1x1x1x4x128xf32>
    tpu.vector_store %arg5[%c0_45, %c0_46, %c2_47, %c0_48, %c0_49], %89 {strides = array<i32>} : memref<1x1x3x4x128xf32, #tpu.memory_space<vmem>>, vector<1x1x1x4x128xf32>,
    return
  }
  func.func @transform_0(%arg0: i32, %arg1: i32, %arg2: i32) -> (i32, i32, i32, i32) {
    %c1_i32 = arith.constant 1 : i32
    %0 = arith.muli %arg0, %c1_i32 : i32
    %1 = arith.addi %0, %arg2 : i32
    %c0_i32 = arith.constant 0 : i32
    %2 = arith.minsi %1, %c0_i32 : i32
    %c0_i32_0 = arith.constant 0 : i32
    %c0_i32_1 = arith.constant 0 : i32
    %c0_i32_2 = arith.constant 0 : i32
    return %arg1, %c0_i32_0, %2, %c0_i32_1 : i32, i32, i32, i32
  }
  func.func @transform_1(%arg0: i32, %arg1: i32, %arg2: i32) -> (i32, i32, i32, i32) {
    %c1_i32 = arith.constant 1 : i32
    %0 = arith.muli %arg0, %c1_i32 : i32
    %1 = arith.addi %0, %arg2 : i32
    %c0_i32 = arith.constant 0 : i32
    %2 = arith.minsi %1, %c0_i32 : i32
    %c0_i32_0 = arith.constant 0 : i32
    %c0_i32_1 = arith.constant 0 : i32
    %c0_i32_2 = arith.constant 0 : i32
    return %arg1, %c0_i32_0, %2, %c0_i32_1 : i32, i32, i32, i32
  }
  func.func @transform_2(%arg0: i32, %arg1: i32, %arg2: i32) -> (i32, i32, i32, i32, i32) {
    %c0_i32 = arith.constant 0 : i32
    %c0_i32_0 = arith.constant 0 : i32
    %c0_i32_1 = arith.constant 0 : i32
    %c0_i32_2 = arith.constant 0 : i32
    return %arg0, %arg1, %c0_i32, %c0_i32_0, %c0_i32_1 : i32, i32, i32, i32, i32
  }
}

</mosaic_0001>

<bundles_post_ra>
// kernel: tpu_custom_call.1
= control target key start
LH: loop header
LB: loop body
LE: loop exit
PB: predicated region body
PF: predicated region fallthrough
CT: control target
= control target key end

     0   :  { %7 = vsyncpa [#allocation3], 0  ;;  %s1002_s0 = inlined_call_operand.hbm [shape: f32[2,4,2,128], index: 0, kind: input, shape index: {}]   ;;  %s1003_s1 = inlined_call_operand.vmem [shape: s8[2,1,2,128], index: 1, kind: input, shape index: {}]   ;;  %s1004_s2 = inlined_call_operand.hbm [shape: f32[1,2,3,4,128], index: 2, kind: output, shape index: {}]  }
   0x1   :  { %9 = vsyncpa [#allocation3 + $0x1], 0 }
   0x2   :  { %10 = vsyncpa [#allocation4], 0 }
   0x3   :  { %12 = vsyncpa [#allocation4 + $0x1], 0  ;;  %s764_s9 = smov 0   ;;  %s766_s10 = smov 0  }
   0x4   :  { %s768_s11 = smov 0   ;;  %s770_s12 = smov 0  }
   0x5   :  { %s772_s13 = smov 0   ;;  %s774_s14 = smov 0  }
   0x6 LB: > { %s528_s15 = sadd.s32 4294967295, %s740_s14   ;;  %s529_s16 = sadd.s32 4294967294, %s740_s14   ;;  %s740_s14 = sphi %s774_s14, %s18_s14   ;;  %s736_s13 = sphi %s772_s13, %s1019_s13   ;;  %s732_s12 = sphi %s770_s12, %s1018_s12   ;;  %s728_s11 = sphi %s768_s11, %s1017_s11   ;;  %s724_s10 = sphi %s766_s10, %s1016_s10   ;;  %s720_s9 = sphi %s764_s9, %s1015_s9  }
   0x7   : > { %s33_s17 = sadd.s32 1, %s736_s13  ;;  %s52_s18 = sadd.s32 1, %s728_s11 }
   0x8   : > { %p35_p0 = scmp.ge.s32.totalorder %s33_s17, 2  ;;  %p59_p1 = scmp.ne.s32.totalorder %s728_s11, %s724_s10 }
   0x9   : > { %p60_p2 = scmp.eq.s32.totalorder %s740_s14, 0  ;;  %p65_p3 = scmp.ne.s32.totalorder %s724_s10, %s720_s9 }
   0xa   : > { %s1021_s17 = smov (%p35_p0, %s33_s17), 0  ;;  %p66_p5 = scmp.eq.s32.totalorder %s528_s15, 0 }
   0xb   : > { %p805_p4 = por %p60_p2, %p59_p1  ;;  %s47_s20 = ssub.s32 %s736_s13, %s1021_s17 }
   0xc   : > { %p125_p6 = scmp.eq.s32.totalorder %s528_s15, 1  ;;  %p50_p7 = scmp.eq.s32.totalorder %s47_s20, 0 }
   0xd   : > { %p811_p8 = por %p66_p5, %p65_p3  ;;  %p131_p10 = scmp.eq.s32.totalorder %s529_s16, 1 }
   0xe   : > { %p815_p9 = por %p125_p6, %p59_p1  ;;  %p563_p13 = scmp.lt.s32.totalorder %s740_s14, 2 }
   0xf   : > { %s820_s23 = scalar_select %p50_p7, %s728_s11, %s52_s18  }
  0x10   : > { %s1008_s22 = scalar_select %p815_p9, 1, 0 }
  0x11   : > { %p822_p11 = por %p131_p10, %p65_p3  ;;  %s151_s25 = sand.u32 1, %s728_s11  }
  0x12   : > { %s532_s26 = sshll.u32 %s151_s25, 3  ;;  %s548_s27 = sshll.u32 %s736_s13, 7 }
  0x13   : > { %s1009_s24 = scalar_select %p822_p11, 1, 0 }
  0x14   : > { %s833_s30 = scalar_lea.hbm %s1002_s0, %s548_s27  ;;  %s155_s3 = scalar_lea.vmem [#allocation2], %s532_s26 }
  0x15   : > { %s166_s4 = sshll.u32 %s155_s3, 4  ;;  %p839_p0 = pnand %p563_p13, %p805_p4  ;;  %s835_s4 = int_to_ptr.vmem [resolvable:$true] %s166_s4 }
  0x16   : > { %s844_s6 = scalar_lea.sflag [#allocation3], %s151_s25  ;;  %s628_s7 = scalar_lea.hbm %s833_s30, 128 }
  0x17   : > { %p629_p2 = scmp.ne.s32.totalorder %s833_s30, %s628_s7  ;;  %p630_p3 = pneg %p839_p0 }
  0x18   : > { %s633_s16 = scalar_lea.hbm %s1002_s0, 256  ;;  %p634_p4 = scmp.lt.u32.totalorder %s833_s30, %s1002_s0 }
  0x19   : > { %p631_p5 = pnand %p630_p3, %p629_p2  ;;  %p635_p7 = scmp.lt.u32.totalorder %s633_s16, %s628_s7 }
  0x1a   : > { %p637_p13 = scmp.lt.u32.totalorder %s628_s7, %s833_s30 }
  0x1b   : > { %p632_p6 = pneg %p631_p5  ;;  %p636_p10 = por %p635_p7, %p634_p4 }
  0x1d   : > { %p638_p12 = por %p637_p13, %p636_p10 }
  0x1f   : > { %p639_p1 = pnand %p638_p12, %p632_p6 }
  0x21   : > { %642 = shalt.err (!%p639_p1)
}
  0x22   : > { %s643_s20 = scalar_lea.vmem %s835_s4, 128  ;;  %s742_s25 = smov [#allocation2]  }
  0x23   : > { %p644_p2 = scmp.ne.s32.totalorder %s835_s4, %s643_s20  ;;  %s648_s26 = sshll.u32 %s742_s25, 4  ;;  %s649_s26 = int_to_ptr.vmem [resolvable:$false] %s648_s26 }
  0x24   : > { %s650_s27 = scalar_lea.vmem %s649_s26, 256  ;;  %p651_p9 = scmp.lt.s32.totalorder %s835_s4, %s649_s26 }
  0x25   : > { %p646_p5 = pnand %p644_p2, %p630_p3  ;;  %p652_p4 = scmp.lt.s32.totalorder %s650_s27, %s643_s20 }
  0x27   : > { %p647_p11 = pneg %p646_p5  ;;  %p653_p7 = por %p652_p4, %p651_p9 }
  0x29   : > { %p654_p10 = pnand %p653_p7, %p647_p11 }
  0x2b   : > { %657 = shalt.err (!%p654_p10)
}
  0x2c   : > { %s743_s28 = smov 32   ;;  %s744_s29 = smov 2  }
  0x2d   : > { %558 = dma.hbm_to_vmem [thread:$0]  (!%p839_p0), %s833_s30, 128, %s835_s4, %s844_s6, %s743_s28, %s743_s28, %s744_s29  }
  0x2e   : > { %p189_p12 = scmp.lt.s32.totalorder %s740_s14, 3  ;;  %p1011_p1 = scmp.ge.s32.totalorder %s740_s14, 1 }
  0x30   : > { %p190_p3 = pnand %p1011_p1, %p189_p12 }
  0x31   : > { %s876_s3 = sand.u32 (!%p190_p3), 1, %s724_s10  }
  0x32   : > { %193 = sbr.rel (%p190_p3) target bundleno = 141 (0x8d), region = 28  ;;  %s536_s7 = sshll.u32 (!%p190_p3), %s876_s3, 3 }
  0x33   : > { %s196_s8 = scalar_lea.sflag (!%p190_p3), [#allocation3], %s876_s3  ;;  %s199_s15 = scalar_lea.vmem (!%p190_p3), [#allocation2], %s536_s7 }
  0x39   : > { %711 = dma.done.wait (%p811_p8), %s196_s8, 128  }
  0x3a   : > { %713 = vsyncadd (%p811_p8), %s196_s8, 4294967168  ;;  %s549_s30 = smul.u32 12, %s876_s3  ;;  %p235_p9 = scmp.lt.s32.totalorder %s732_s12, 1  ;;  %v745_v0 = vmov 0.0   ;;  %vm257_vm0 = vcmask 1041408   ;;  %vm390_vm5 = vcmask 1040384  }
  0x3b   : > { %v251_v2 = vld [vmem:[%s199_s15] sm:$0x3]  ;;  %v252_v3 = vld [vmem:[%s199_s15 + $0x2] sm:$0x3]  ;;  %v253_v5 = vld [vmem:[%s199_s15 + $0x4] sm:$0x3] }
  0x3c   : > { %s236_s4 = scalar_select %p235_p9, %s732_s12, 1  ;;  %v254_v6 = vld [vmem:[%s199_s15 + $0x6] sm:$0x3]  ;;  %v258_v7 = vsel %vm257_vm0, %v251_v2, -inf  ;;  %v259_v8 = vsel %vm257_vm0, %v252_v3, -inf  ;;  %v260_v9 = vsel %vm257_vm0, %v253_v5, -inf }
  0x3d   : > { %s887_s5 = scalar_lea.vmem [#allocation5], %s549_s30  ;;  %v261_v10 = vsel %vm257_vm0, %v254_v6, -inf  ;;  %v262_v11 = vmax.f32 %v258_v7, %v259_v8  ;;  %vm393_vm6 = vcmask 1042432   ;;  %s550_s18 = smul.u32 192, %s732_s12 }
  0x3e   : > { %248 = vst [vmem:[%s887_s5] sm:$0xf] %v745_v0  ;;  %249 = vst [vmem:[%s887_s5 + $0x4] sm:$0xf] %v745_v0  ;;  %s240_s21 = scalar_lea.vmem %s1003_s1, %s236_s4  ;;  %v263_v12 = vmax.f32 %v260_v9, %v261_v10  ;;  %s427_s19 = sshll.u32 %s887_s5, 4  ;;  %s951_s19 = int_to_ptr.vmem [resolvable:$true] %s427_s19 }
  0x3f   : > { %250 = vst [vmem:[%s887_s5 + $0x8] sm:$0xf] %v745_v0  ;;  %v255_v1 = vld [vmem:[%s240_s21] sm:$0x1]  ;;  %s949_s25 = scalar_lea.hbm %s1004_s2, %s550_s18  ;;  %s412_s26 = scalar_lea.sflag [#allocation4], %s876_s3 }
  0x40   : > { %v256_v4 = vunpack.c.0.s8 %v255_v1  ;;  %v264_v16 = vmax.f32 %v262_v11, %v263_v12  ;;  %s658_s27 = scalar_lea.vmem %s951_s19, 192  ;;  %p1012_p11 = scmp.ne.s32.totalorder %s1008_s22, 0 }
  0x41   : > { %p659_p8 = scmp.ne.s32.totalorder %s951_s19, %s658_s27  ;;  %s746_s28 = smov [#allocation5]  }
  0x42   : > { %vm289_vm1 = vcmp.eq.s32.totalorder %v256_v4, 0  ;;  %vm314_vm2 = vcmp.eq.s32.totalorder %v256_v4, 1  ;;  %vm339_vm3 = vcmp.eq.s32.totalorder %v256_v4, 2  ;;  %vm364_vm4 = vcmp.eq.s32.totalorder %v256_v4, 3  ;;  %s662_s29 = sshll.u32 %s746_s28, 4  ;;  %s663_s29 = int_to_ptr.vmem [resolvable:$false] %s662_s29 }
  0x43   : > { %v899_v13 = vsel %vm289_vm1, 1.0, %v745_v0  ;;  %v901_v14 = vsel %vm314_vm2, 1.0, %v745_v0  ;;  %v903_v15 = vsel %vm339_vm3, 1.0, %v745_v0  ;;  %v905_v17 = vsel %vm364_vm4, 1.0, %v745_v0  ;;  %p660_p0 = pnand %p659_p8, %p1012_p11  ;;  %s664_s7 = scalar_lea.vmem %s663_s29, 384 }
  0x44   : > { %v300_v18 = vsel %vm257_vm0, %v899_v13, 0.0  ;;  %v325_v19 = vsel %vm257_vm0, %v901_v14, 0.0  ;;  %v350_v22 = vsel %vm257_vm0, %v903_v15, 0.0  ;;  %v375_v23 = vsel %vm257_vm0, %v905_v17, 0.0  ;;  %p665_p13 = scmp.lt.s32.totalorder %s951_s19, %s663_s29  ;;  %p666_p2 = scmp.lt.s32.totalorder %s664_s7, %s658_s27 }
  0x45   : > { %v301_v20 = vrot.slane %v300_v18, 4  ;;  %v326_v21 = vrot.slane %v325_v19, 4  ;;  %v265_v24 = vsub.f32 %v251_v2, %v264_v16  ;;  %v266_v25 = vsub.f32 %v252_v3, %v264_v16  ;;  %v541_v55 = vld [vmem:[%s887_s5 + $0x4] sm:$0xf]  ;;  %p661_p6 = pneg %p660_p0 }
  0x46   : > { %v267_v26 = vsub.f32 %v253_v5, %v264_v16  ;;  %v268_v27 = vsub.f32 %v254_v6, %v264_v16  ;;  %v351_v30 = vrot.slane %v350_v22, 4  ;;  %v376_v31 = vrot.slane %v375_v23, 4  ;;  %p667_p5 = por %p666_p2, %p665_p13 }
  0x47   : > { %v302_v28 = vadd.f32 %v301_v20, %v300_v18  ;;  %v327_v29 = vadd.f32 %v326_v21, %v325_v19  ;;  %v269_v32 = vmul.f32 1.442695, %v265_v24  ;;  %v271_v33 = vmul.f32 1.442695, %v266_v25 }
  0x48   : > { %v273_v34 = vmul.f32 1.442695, %v267_v26  ;;  %v275_v35 = vmul.f32 1.442695, %v268_v27  ;;  %v352_v38 = vadd.f32 %v351_v30, %v350_v22  ;;  %v377_v39 = vadd.f32 %v376_v31, %v375_v23  ;;  %p668_p4 = pnand %p667_p5, %p661_p6 }
  0x49   : > { %v303_v36 = vrot.slane %v302_v28, 2  ;;  %v328_v37 = vrot.slane %v327_v29, 2  ;;  %618 = vpow2.f32 %v269_v32 }
  0x4a   : > { %620 = vpow2.f32 %v271_v33  ;;  %v353_v42 = vrot.slane %v352_v38, 2  ;;  %v378_v43 = vrot.slane %v377_v39, 2 }
  0x4b   : > { %v304_v40 = vadd.f32 %v303_v36, %v302_v28  ;;  %v329_v41 = vadd.f32 %v328_v37, %v327_v29  ;;  %622 = vpow2.f32 %v273_v34 }
  0x4c   : > { %624 = vpow2.f32 %v275_v35  ;;  %v354_v46 = vadd.f32 %v353_v42, %v352_v38  ;;  %v379_v47 = vadd.f32 %v378_v43, %v377_v39 }
  0x4d   : > { %v305_v44 = vrot.slane %v304_v40, 1  ;;  %v330_v45 = vrot.slane %v329_v41, 1 }
  0x4e   : > { %v355_v50 = vrot.slane %v354_v46, 1  ;;  %v380_v51 = vrot.slane %v379_v47, 1 }
  0x4f   : > { %v306_v48 = vadd.f32 %v305_v44, %v304_v40  ;;  %v331_v49 = vadd.f32 %v330_v45, %v329_v41 }
  0x50   : > { %v356_v52 = vadd.f32 %v355_v50, %v354_v46  ;;  %v381_v54 = vadd.f32 %v380_v51, %v379_v47 }
  0x51   : > { %v399_v53 = vsel %vm390_vm5, %v306_v48, %v331_v49 }
  0x52   : > { %v400_v56 = vsel %vm257_vm0, %v399_v53, %v356_v52 }
  0x53   : > { %v619_v57 = vpop.eup %618  ;;  %v401_v58 = vsel %vm393_vm6, %v400_v56, %v381_v54 }
  0x54   : > { %v621_v59 = vpop.eup %620  ;;  %v277_v60 = vsel %vm257_vm0, %v619_v57, 0.0  ;;  %v402_v61 = vadd.f32 %v541_v55, %v401_v58 }
  0x55   : > { %v623_v62 = vpop.eup %622  ;;  %v278_v63 = vsel %vm257_vm0, %v621_v59, 0.0 }
  0x56   : > { %v625_v0 = vpop.eup %624  ;;  %v279_v1 = vadd.f32 %v278_v63, %v277_v60  ;;  %v280_v2 = vsel %vm257_vm0, %v623_v62, 0.0  ;;  %542 = vst [vmem:[%s887_s5 + $0x4] sm:$0xf] %v402_v61 }
  0x57   : > { %v282_v3 = vsel %vm257_vm0, %v625_v0, 0.0 }
  0x58   : > { %v281_v4 = vadd.f32 %v280_v2, %v279_v1 }
  0x5a   : > { %v283_v5 = vadd.f32 %v282_v3, %v281_v4 }
  0x5c   : > { %626 = vrcp.f32 %v283_v5 }
  0x66   : > { %v627_v6 = vpop.eup %626 }
  0x67   : > { %v285_v7 = vmul.f32 %v627_v6, %v619_v57  ;;  %v286_v8 = vmul.f32 %v627_v6, %v621_v59  ;;  %v287_v9 = vmul.f32 %v627_v6, %v623_v62  ;;  %v288_v10 = vmul.f32 %v627_v6, %v625_v0 }
  0x69   : > { %v292_v11 = vmul.f32 %v899_v13, %v285_v7  ;;  %v317_v12 = vmul.f32 %v901_v14, %v286_v8  ;;  %v342_v16 = vmul.f32 %v903_v15, %v287_v9  ;;  %v367_v18 = vmul.f32 %v905_v17, %v288_v10 }
  0x6a   : > { %v307_v19 = vsel %vm257_vm0, %v285_v7, 0.0  ;;  %v332_v20 = vsel %vm257_vm0, %v286_v8, 0.0  ;;  %v357_v21 = vsel %vm257_vm0, %v287_v9, 0.0  ;;  %v382_v22 = vsel %vm257_vm0, %v288_v10, 0.0  ;;  %v389_v7 = vld [vmem:[%s887_s5] sm:$0xf] }
  0x6b   : > { %v293_v23 = vsel %vm257_vm0, %v292_v11, 0.0  ;;  %v318_v24 = vsel %vm257_vm0, %v317_v12, 0.0  ;;  %v343_v13 = vsel %vm257_vm0, %v342_v16, 0.0  ;;  %v368_v14 = vsel %vm257_vm0, %v367_v18, 0.0  ;;  %v543_v10 = vld [vmem:[%s887_s5 + $0x8] sm:$0xf] }
  0x6c   : > { %v294_v25 = vrot.slane %v293_v23, 4  ;;  %v319_v15 = vrot.slane %v318_v24, 4  ;;  %v344_v26 = vrot.slane %v343_v13, 4  ;;  %v369_v17 = vrot.slane %v368_v14, 4 }
  0x6d   : > { %v308_v27 = vrot.slane %v307_v19, 4  ;;  %v333_v28 = vrot.slane %v332_v20, 4  ;;  %v358_v29 = vrot.slane %v357_v21, 4  ;;  %v383_v30 = vrot.slane %v382_v22, 4 }
  0x6e   : > { %v295_v31 = vadd.f32 %v294_v25, %v293_v23  ;;  %v320_v32 = vadd.f32 %v319_v15, %v318_v24  ;;  %v345_v33 = vadd.f32 %v344_v26, %v343_v13  ;;  %v370_v34 = vadd.f32 %v369_v17, %v368_v14 }
  0x6f   : > { %v309_v35 = vadd.f32 %v308_v27, %v307_v19  ;;  %v334_v36 = vadd.f32 %v333_v28, %v332_v20  ;;  %v359_v37 = vadd.f32 %v358_v29, %v357_v21  ;;  %v384_v38 = vadd.f32 %v383_v30, %v382_v22 }
  0x70   : > { %v296_v39 = vrot.slane %v295_v31, 2  ;;  %v321_v40 = vrot.slane %v320_v32, 2  ;;  %v346_v41 = vrot.slane %v345_v33, 2  ;;  %v371_v42 = vrot.slane %v370_v34, 2 }
  0x71   : > { %v310_v43 = vrot.slane %v309_v35, 2  ;;  %v335_v44 = vrot.slane %v334_v36, 2  ;;  %v360_v45 = vrot.slane %v359_v37, 2  ;;  %v385_v46 = vrot.slane %v384_v38, 2 }
  0x72   : > { %v297_v47 = vadd.f32 %v296_v39, %v295_v31  ;;  %v322_v48 = vadd.f32 %v321_v40, %v320_v32  ;;  %v347_v49 = vadd.f32 %v346_v41, %v345_v33  ;;  %v372_v50 = vadd.f32 %v371_v42, %v370_v34 }
  0x73   : > { %v311_v51 = vadd.f32 %v310_v43, %v309_v35  ;;  %v336_v52 = vadd.f32 %v335_v44, %v334_v36  ;;  %v361_v53 = vadd.f32 %v360_v45, %v359_v37  ;;  %v386_v54 = vadd.f32 %v385_v46, %v384_v38 }
  0x74   : > { %v298_v55 = vrot.slane %v297_v47, 1  ;;  %v323_v56 = vrot.slane %v322_v48, 1  ;;  %v348_v57 = vrot.slane %v347_v49, 1  ;;  %v373_v58 = vrot.slane %v372_v50, 1 }
  0x75   : > { %v312_v59 = vrot.slane %v311_v51, 1  ;;  %v337_v60 = vrot.slane %v336_v52, 1  ;;  %v362_v61 = vrot.slane %v361_v53, 1  ;;  %v387_v62 = vrot.slane %v386_v54, 1 }
  0x76   : > { %v299_v63 = vadd.f32 %v298_v55, %v297_v47  ;;  %v324_v0 = vadd.f32 %v323_v56, %v322_v48  ;;  %v349_v1 = vadd.f32 %v348_v57, %v347_v49  ;;  %v374_v2 = vadd.f32 %v373_v58, %v372_v50 }
  0x77   : > { %v313_v3 = vadd.f32 %v312_v59, %v311_v51  ;;  %v338_v4 = vadd.f32 %v337_v60, %v336_v52  ;;  %v363_v5 = vadd.f32 %v362_v61, %v361_v53  ;;  %v388_v6 = vadd.f32 %v387_v62, %v386_v54 }
  0x78   : > { %v391_v8 = vsel %vm390_vm5, %v299_v63, %v324_v0 }
  0x79   : > { %v392_v9 = vsel %vm257_vm0, %v391_v8, %v349_v1  ;;  %v406_v11 = vsel %vm390_vm5, %v313_v3, %v338_v4 }
  0x7a   : > { %v394_v12 = vsel %vm393_vm6, %v392_v9, %v374_v2  ;;  %v407_v16 = vsel %vm257_vm0, %v406_v11, %v363_v5 }
  0x7b   : > { %v395_v18 = vadd.f32 %v394_v12, %v389_v7  ;;  %v408_v19 = vsel %vm393_vm6, %v407_v16, %v388_v6 }
  0x7c   : > { %v409_v20 = vadd.f32 %v543_v10, %v408_v19 }
  0x7d   : > { %396 = vst [vmem:[%s887_s5] sm:$0xf] %v395_v18 }
  0x7e   : > { %544 = vst [vmem:[%s887_s5 + $0x8] sm:$0xf] %v409_v20 }
  0x7f   : > { %671 = shalt.err (!%p668_p4)
}
  0x80   : > { %s672_s8 = scalar_lea.hbm %s949_s25, 192  ;;  %s676_s4 = scalar_lea.hbm %s1004_s2, 384 }
  0x81   : > { %p673_p7 = scmp.ne.s32.totalorder %s949_s25, %s672_s8  ;;  %p677_p1 = scmp.lt.u32.totalorder %s949_s25, %s1004_s2 }
  0x82   : > { %p678_p3 = scmp.lt.u32.totalorder %s676_s4, %s672_s8  ;;  %p680_p8 = scmp.lt.u32.totalorder %s672_s8, %s949_s25 }
  0x83   : > { %p674_p10 = pnand %p673_p7, %p1012_p11 }
  0x84   : > { %p679_p9 = por %p678_p3, %p677_p1 }
  0x85   : > { %p675_p12 = pneg %p674_p10 }
  0x86   : > { %p681_p0 = por %p680_p8, %p679_p9 }
  0x88   : > { %p682_p6 = pnand %p681_p0, %p675_p12 }
  0x8a   : > { %685 = shalt.err (!%p682_p6)
}
  0x8b   : > { %s747_s16 = smov 64   ;;  %s748_s21 = smov 4  }
  0x8c   : > { %553 = dma.vmem_to_hbm [thread:$0]  (%p1012_p11), %s951_s19, 192, %s949_s25, %s412_s26, %s747_s16, %s747_s16, %s748_s21  }
  0x8d PF: > { %s442_s18 = sand.u32 1, %s720_s9   ;;  %p1013_p13 = scmp.ne.s32.totalorder %s1009_s24, 0 }
  0x8e   : > { %p1014_p2 = scmp.ge.s32.totalorder %s740_s14, 2  ;;  %s443_s20 = scalar_lea.sflag [#allocation4], %s442_s18 }
  0x90   : > { %p560_p5 = pnand %p1014_p2, %p1013_p13 }
  0x92   : > { %715 = dma.done.wait (!%p560_p5), %s443_s20, 192  }
  0x93   : > { %717 = vsyncadd (!%p560_p5), %s443_s20, 4294967104  ;;  %s18_s14 = sadd.s32 1, %s740_s14   ;;  %s1015_s9 = smov %s724_s10 }
  0x94   : > { %p15_p4 = scmp.ge.s32.totalorder %s18_s14, 4   ;;  %s1016_s10 = smov %s728_s11 }
  0x95   : > { %s1017_s11 = smov %s820_s23  ;;  %s1018_s12 = smov %s736_s13 }
  0x96   : > { %s1019_s13 = smov %s1021_s17  ;;  %17 = sbr.rel (!%p15_p4) target bundleno = 6 (0x6), region = 82 }
  0x9d   :  { %448 = vsyncpa [#allocation3], 1 }
  0x9e   :  { %450 = vsyncpa [#allocation3 + $0x1], 1 }
  0x9f   :  { %451 = vsyncpa [#allocation4], 1 }
  0xa0   :  { %453 = vsyncpa [#allocation4 + $0x1], 1 }

</bundles_post_ra>
